<compile_context>
chip_gen: v7x
topology: tpu7x:2x2x1
jax: 0.10.0
libtpu: 0.0.40
codegen_flags: <defaults>
</compile_context>

<pallas_src>
import functools

import jax
import jax.numpy as jnp
from jax import lax
from jax.experimental import pallas as pl
from jax.experimental.pallas import tpu as pltpu


def _round_up(x, m):
    return ((x + m - 1) // m) * m


def _pseudo_labeled_bce_kernel(lpred_ref, ltrue_ref, upred_ref, out_ref,
                               l_acc, u_acc, c_acc,
                               *, n_rows, tile_rows, pl_threshold,
                               unlabeled_weight, inv_total_elems,
                               has_partial_tile):
    i = pl.program_id(0)

    # ---- init accumulators on the first tile ----
    @pl.when(i == 0)
    def _():
        l_acc[...] = jnp.zeros_like(l_acc)
        u_acc[...] = jnp.zeros_like(u_acc)
        c_acc[...] = jnp.zeros_like(c_acc)

    lp = lpred_ref[...].astype(jnp.float32)
    lt = ltrue_ref[...].astype(jnp.float32)
    up = upred_ref[...].astype(jnp.float32)

    # ---- labeled (supervised) BCE; PyTorch nn.BCELoss clamps log terms at -100 ----
    log_p = jnp.maximum(jnp.log(lp), -100.0)
    log_1mp = jnp.maximum(jnp.log(1.0 - lp), -100.0)
    l_bce = -(lt * log_p + (1.0 - lt) * log_1mp)

    # ---- unlabeled branch, exact algebraic simplification ----
    #   pseudo = (up > 0.5); BCE(up, pseudo) == -log(max(up, 1-up))
    #   mask   = |up - (1 - pseudo)| > thr  ==  max(up, 1-up) > thr
    #   max(up, 1-up) >= 0.5 so no clamp needed.
    pmax = jnp.maximum(up, 1.0 - up)
    umask = pmax > jnp.float32(pl_threshold)
    u_bce = -jnp.log(pmax)

    if has_partial_tile:
        # Trace-time branch: only emitted when the last tile is partial.
        row = lax.broadcasted_iota(jnp.int32, lp.shape, 0) + i * tile_rows
        valid = row < n_rows
        l_bce = jnp.where(valid, l_bce, jnp.zeros_like(l_bce))
        umask = jnp.logical_and(umask, valid)

    zero = jnp.zeros_like(l_bce)
    l_acc[...] += l_bce
    u_acc[...] += jnp.where(umask, u_bce, zero)
    c_acc[...] += jnp.where(umask, jnp.ones_like(l_bce), zero)

    # ---- finalize: single cross-lane reduce + scalar math on the last tile ----
    @pl.when(i == pl.num_programs(0) - 1)
    def _():
        l_sum = jnp.sum(l_acc[...])
        u_sum = jnp.sum(u_acc[...])
        cnt = jnp.sum(c_acc[...])
        lloss = l_sum * jnp.float32(inv_total_elems)
        uloss = jnp.float32(unlabeled_weight) * u_sum / jnp.maximum(cnt, 1.0)
        combined = (lloss + uloss) * jnp.float32(1.0 / (1.0 + unlabeled_weight))
        out_ref[0, 0] = jnp.where(cnt == 0.0, lloss, combined)


def pseudo_labeled_loss(label_pred, true, unlabel_pred,
                        pl_threshold=0.5, unlabeled_weight=1.0,
                        tile_rows=None):
    # TODO(synk): the fused kernel assumes labeled and unlabeled batches share a
    # shape; independent batch sizes would need per-stream grids.
    N, D = label_pred.shape
    assert true.shape == (N, D) and unlabel_pred.shape == (N, D)

    itemsizes = [jnp.dtype(a.dtype).itemsize
                 for a in (label_pred, true, unlabel_pred)]
    # Sublane alignment: 8 rows for 32-bit inputs, 16 if any input is sub-32-bit.
    row_align = 8 if min(itemsizes) >= 4 else 16

    if tile_rows is None:
        # Per-row VMEM cost: 3 double-buffered input tiles + 3 f32 accumulators.
        bytes_per_row = D * (2 * sum(itemsizes) + 3 * 4)
        budget = 24 << 20  # stay comfortably under the default scoped-VMEM limit
        cap = max(row_align, (budget // bytes_per_row) // row_align * row_align)
        tile_rows = max(row_align, min(2048, cap, _round_up(N, row_align)))
    assert tile_rows % row_align == 0, "tile_rows must be a sublane multiple"

    grid = (pl.cdiv(N, tile_rows),)
    kernel = functools.partial(
        _pseudo_labeled_bce_kernel,
        n_rows=N,
        tile_rows=tile_rows,
        pl_threshold=float(pl_threshold),
        unlabeled_weight=float(unlabeled_weight),
        inv_total_elems=1.0 / float(N * D),
        has_partial_tile=(N % tile_rows != 0),
    )

    in_spec = pl.BlockSpec((tile_rows, D), lambda i: (i, 0))
    out = pl.pallas_call(
        kernel,
        out_shape=jax.ShapeDtypeStruct((1, 1), jnp.float32),
        grid=grid,
        in_specs=[in_spec, in_spec, in_spec],
        out_specs=pl.BlockSpec((1, 1), lambda i: (0, 0),
                               memory_space=pltpu.MemorySpace.SMEM),
        scratch_shapes=[
            pltpu.VMEM((tile_rows, D), jnp.float32),   # labeled BCE partial sums
            pltpu.VMEM((tile_rows, D), jnp.float32),   # masked unlabeled BCE partials
            pltpu.VMEM((tile_rows, D), jnp.float32),   # mask-count partials
        ],
        compiler_params=pltpu.CompilerParams(
            dimension_semantics=("arbitrary",)),
    )(label_pred, true, unlabel_pred)
    return out[0, 0]


def _reference(label_pred, true, unlabel_pred, pl_threshold=0.5, unlabeled_weight=1.0):
    lp = label_pred.astype(jnp.float32)
    lt = true.astype(jnp.float32)
    up = unlabel_pred.astype(jnp.float32)

    def bce(p, y):
        log_p = jnp.maximum(jnp.log(p), -100.0)
        log_1mp = jnp.maximum(jnp.log(1.0 - p), -100.0)
        return -(y * log_p + (1.0 - y) * log_1mp)

    lloss = jnp.mean(bce(lp, lt))
    pseudo = (up > 0.5).astype(jnp.float32)
    mask = jnp.abs(up - (1.0 - pseudo)) > pl_threshold
    maskf = mask.astype(jnp.float32)
    cnt = jnp.sum(maskf)
    u_mean = jnp.sum(bce(up, pseudo) * maskf) / jnp.maximum(cnt, 1.0)
    uloss = unlabeled_weight * u_mean
    return jnp.where(cnt == 0.0, lloss,
                     (lloss + uloss) / (1.0 + unlabeled_weight))


if __name__ == "__main__":
    key = jax.random.PRNGKey(0)
    k1, k2, k3 = jax.random.split(key, 3)

    # Small shapes; N deliberately not a multiple of the tile rows so the
    # partial-tile masking path is exercised (3 tiles of 8 rows for N=20).
    N, D = 20, 128
    label_pred = jax.nn.sigmoid(jax.random.normal(k1, (N, D), jnp.float32))
    true = jax.random.bernoulli(k2, 0.5, (N, D)).astype(jnp.float32)
    unlabel_pred = jax.nn.sigmoid(jax.random.normal(k3, (N, D), jnp.float32))

    out = pseudo_labeled_loss(label_pred, true, unlabel_pred,
                              pl_threshold=0.5, unlabeled_weight=1.0,
                              tile_rows=8)
    out = jax.block_until_ready(out)

    ref = _reference(label_pred, true, unlabel_pred, 0.5, 1.0)
    assert jnp.allclose(out, ref, rtol=1e-5, atol=1e-5), (out, ref)
    print("KERNEL_OK")
</pallas_src>

<mosaic_0001>
module attributes {stable_mosaic.version = 11 : i64} {
  func.func @_pseudo_labeled_bce_kernel(%arg0: i32, %arg1: memref<8x128xf32, #tpu.memory_space<vmem>>, %arg2: memref<8x128xf32, #tpu.memory_space<vmem>>, %arg3: memref<8x128xf32, #tpu.memory_space<vmem>>, %arg4: memref<1x1xf32, #tpu.memory_space<smem>>, %arg5: memref<8x128xf32, #tpu.memory_space<vmem>>, %arg6: memref<8x128xf32, #tpu.memory_space<vmem>>, %arg7: memref<8x128xf32, #tpu.memory_space<vmem>>) attributes {dimension_semantics = [#tpu.dimension_semantics<arbitrary>], iteration_bounds = array<i64: 3>, scalar_prefetch = 0 : i64, scratch_operands = 3 : i64, tpu.core_type = #tpu.core_type<tc>, window_params = [{transform_indices = @transform_0, window_bounds = array<i64: 8, 128>}, {transform_indices = @transform_1, window_bounds = array<i64: 8, 128>}, {transform_indices = @transform_2, window_bounds = array<i64: 8, 128>}, {transform_indices = @transform_3, window_bounds = array<i64: 1, 1>}]} {
    %c0_i32 = arith.constant 0 : i32
    %0 = arith.cmpi eq, %arg0, %c0_i32 : i32
    %1 = arith.extui %0 : i1 to i32
    %c0_i32_0 = arith.constant 0 : i32
    %2 = arith.cmpi ne, %1, %c0_i32_0 : i32
    scf.if %2 {
      %cst_29 = arith.constant 0.000000e+00 : f32
      %54 = vector.broadcast %cst_29 : f32 to vector<8x128xf32>
      %c0_30 = arith.constant 0 : index
      %c0_31 = arith.constant 0 : index
      %55 = vector.load %arg5[%c0_30, %c0_31] : memref<8x128xf32, #tpu.memory_space<vmem>>, vector<8x128xf32>
      tpu.vector_store %arg5[%c0_30, %c0_31], %54 {strides = array<i32>} : memref<8x128xf32, #tpu.memory_space<vmem>>, vector<8x128xf32>,
      %cst_32 = arith.constant 0.000000e+00 : f32
      %56 = vector.broadcast %cst_32 : f32 to vector<8x128xf32>
      %c0_33 = arith.constant 0 : index
      %c0_34 = arith.constant 0 : index
      %57 = vector.load %arg6[%c0_33, %c0_34] : memref<8x128xf32, #tpu.memory_space<vmem>>, vector<8x128xf32>
      tpu.vector_store %arg6[%c0_33, %c0_34], %56 {strides = array<i32>} : memref<8x128xf32, #tpu.memory_space<vmem>>, vector<8x128xf32>,
      %cst_35 = arith.constant 0.000000e+00 : f32
      %58 = vector.broadcast %cst_35 : f32 to vector<8x128xf32>
      %c0_36 = arith.constant 0 : index
      %c0_37 = arith.constant 0 : index
      %59 = vector.load %arg7[%c0_36, %c0_37] : memref<8x128xf32, #tpu.memory_space<vmem>>, vector<8x128xf32>
      tpu.vector_store %arg7[%c0_36, %c0_37], %58 {strides = array<i32>} : memref<8x128xf32, #tpu.memory_space<vmem>>, vector<8x128xf32>,
    } else {
    }
    %c0 = arith.constant 0 : index
    %c0_1 = arith.constant 0 : index
    %3 = vector.load %arg1[%c0, %c0_1] : memref<8x128xf32, #tpu.memory_space<vmem>>, vector<8x128xf32>
    %c0_2 = arith.constant 0 : index
    %c0_3 = arith.constant 0 : index
    %4 = vector.load %arg2[%c0_2, %c0_3] : memref<8x128xf32, #tpu.memory_space<vmem>>, vector<8x128xf32>
    %c0_4 = arith.constant 0 : index
    %c0_5 = arith.constant 0 : index
    %5 = vector.load %arg3[%c0_4, %c0_5] : memref<8x128xf32, #tpu.memory_space<vmem>>, vector<8x128xf32>
    %6 = math.log %3 : vector<8x128xf32>
    %cst = arith.constant -1.000000e+02 : f32
    %7 = vector.broadcast %cst : f32 to vector<8x128xf32>
    %8 = arith.maximumf %6, %7 : vector<8x128xf32>
    %cst_6 = arith.constant 1.000000e+00 : f32
    %9 = vector.broadcast %cst_6 : f32 to vector<8x128xf32>
    %10 = arith.subf %9, %3 : vector<8x128xf32>
    %11 = math.log %10 : vector<8x128xf32>
    %cst_7 = arith.constant -1.000000e+02 : f32
    %12 = vector.broadcast %cst_7 : f32 to vector<8x128xf32>
    %13 = arith.maximumf %11, %12 : vector<8x128xf32>
    %14 = arith.mulf %4, %8 : vector<8x128xf32>
    %cst_8 = arith.constant 1.000000e+00 : f32
    %15 = vector.broadcast %cst_8 : f32 to vector<8x128xf32>
    %16 = arith.subf %15, %4 : vector<8x128xf32>
    %17 = arith.mulf %16, %13 : vector<8x128xf32>
    %18 = arith.addf %14, %17 : vector<8x128xf32>
    %cst_9 = arith.constant 0.000000e+00 : f32
    %19 = vector.broadcast %cst_9 : f32 to vector<8x128xf32>
    %20 = arith.subf %19, %18 : vector<8x128xf32>
    %cst_10 = arith.constant 1.000000e+00 : f32
    %21 = vector.broadcast %cst_10 : f32 to vector<8x128xf32>
    %22 = arith.subf %21, %5 : vector<8x128xf32>
    %23 = arith.maximumf %5, %22 : vector<8x128xf32>
    %cst_11 = arith.constant 5.000000e-01 : f32
    %24 = vector.broadcast %cst_11 : f32 to vector<8x128xf32>
    %25 = arith.cmpf ogt, %23, %24 : vector<8x128xf32>
    %26 = math.log %23 : vector<8x128xf32>
    %cst_12 = arith.constant 0.000000e+00 : f32
    %27 = vector.broadcast %cst_12 : f32 to vector<8x128xf32>
    %28 = arith.subf %27, %26 : vector<8x128xf32>
    %29 = tpu.iota {dimensions = array<i32: 0>} : vector<8x128xi32>
    %c8_i32 = arith.constant 8 : i32
    %30 = arith.muli %arg0, %c8_i32 : i32
    %31 = vector.broadcast %30 : i32 to vector<8x128xi32>
    %32 = arith.addi %29, %31 : vector<8x128xi32>
    %c20_i32 = arith.constant 20 : i32
    %33 = vector.broadcast %c20_i32 : i32 to vector<8x128xi32>
    %34 = arith.cmpi slt, %32, %33 : vector<8x128xi32>
    %cst_13 = arith.constant 0.000000e+00 : f32
    %35 = vector.broadcast %cst_13 : f32 to vector<8x128xf32>
    %36 = arith.select %34, %20, %35 : vector<8x128xi1>, vector<8x128xf32>
    %37 = arith.andi %25, %34 : vector<8x128xi1>
    %cst_14 = arith.constant 0.000000e+00 : f32
    %38 = vector.broadcast %cst_14 : f32 to vector<8x128xf32>
    %c0_15 = arith.constant 0 : index
    %c0_16 = arith.constant 0 : index
    %39 = vector.load %arg5[%c0_15, %c0_16] : memref<8x128xf32, #tpu.memory_space<vmem>>, vector<8x128xf32>
    %40 = arith.addf %39, %36 : vector<8x128xf32>
    %c0_17 = arith.constant 0 : index
    %c0_18 = arith.constant 0 : index
    %41 = vector.load %arg5[%c0_17, %c0_18] : memref<8x128xf32, #tpu.memory_space<vmem>>, vector<8x128xf32>
    tpu.vector_store %arg5[%c0_17, %c0_18], %40 {strides = array<i32>} : memref<8x128xf32, #tpu.memory_space<vmem>>, vector<8x128xf32>,
    %c0_19 = arith.constant 0 : index
    %c0_20 = arith.constant 0 : index
    %42 = vector.load %arg6[%c0_19, %c0_20] : memref<8x128xf32, #tpu.memory_space<vmem>>, vector<8x128xf32>
    %43 = arith.select %37, %28, %38 : vector<8x128xi1>, vector<8x128xf32>
    %44 = arith.addf %42, %43 : vector<8x128xf32>
    %c0_21 = arith.constant 0 : index
    %c0_22 = arith.constant 0 : index
    %45 = vector.load %arg6[%c0_21, %c0_22] : memref<8x128xf32, #tpu.memory_space<vmem>>, vector<8x128xf32>
    tpu.vector_store %arg6[%c0_21, %c0_22], %44 {strides = array<i32>} : memref<8x128xf32, #tpu.memory_space<vmem>>, vector<8x128xf32>,
    %c0_23 = arith.constant 0 : index
    %c0_24 = arith.constant 0 : index
    %46 = vector.load %arg7[%c0_23, %c0_24] : memref<8x128xf32, #tpu.memory_space<vmem>>, vector<8x128xf32>
    %cst_25 = arith.constant 1.000000e+00 : f32
    %47 = vector.broadcast %cst_25 : f32 to vector<8x128xf32>
    %48 = arith.select %37, %47, %38 : vector<8x128xi1>, vector<8x128xf32>
    %49 = arith.addf %46, %48 : vector<8x128xf32>
    %c0_26 = arith.constant 0 : index
    %c0_27 = arith.constant 0 : index
    %50 = vector.load %arg7[%c0_26, %c0_27] : memref<8x128xf32, #tpu.memory_space<vmem>>, vector<8x128xf32>
    tpu.vector_store %arg7[%c0_26, %c0_27], %49 {strides = array<i32>} : memref<8x128xf32, #tpu.memory_space<vmem>>, vector<8x128xf32>,
    %c2_i32 = arith.constant 2 : i32
    %51 = arith.cmpi eq, %arg0, %c2_i32 : i32
    %52 = arith.extui %51 : i1 to i32
    %c0_i32_28 = arith.constant 0 : i32
    %53 = arith.cmpi ne, %52, %c0_i32_28 : i32
    scf.if %53 {
      %c0_29 = arith.constant 0 : index
      %c0_30 = arith.constant 0 : index
      %54 = vector.load %arg5[%c0_29, %c0_30] : memref<8x128xf32, #tpu.memory_space<vmem>>, vector<8x128xf32>
      %55 = vector.shape_cast %54 : vector<8x128xf32> to vector<1x8x128xf32>
      %cst_31 = arith.constant dense<0.000000e+00> : vector<1xf32>
      %56 = vector.multi_reduction <add>, %55, %cst_31 [1, 2] : vector<1x8x128xf32> to vector<1xf32>
      %57 = vector.shape_cast %56 : vector<1xf32> to vector<1x1x1xf32>
      %58 = vector.extract %57[0, 0, 0] : f32 from vector<1x1x1xf32>
      %c0_32 = arith.constant 0 : index
      %c0_33 = arith.constant 0 : index
      %59 = vector.load %arg6[%c0_32, %c0_33] : memref<8x128xf32, #tpu.memory_space<vmem>>, vector<8x128xf32>
      %60 = vector.shape_cast %59 : vector<8x128xf32> to vector<1x8x128xf32>
      %cst_34 = arith.constant dense<0.000000e+00> : vector<1xf32>
      %61 = vector.multi_reduction <add>, %60, %cst_34 [1, 2] : vector<1x8x128xf32> to vector<1xf32>
      %62 = vector.shape_cast %61 : vector<1xf32> to vector<1x1x1xf32>
      %63 = vector.extract %62[0, 0, 0] : f32 from vector<1x1x1xf32>
      %c0_35 = arith.constant 0 : index
      %c0_36 = arith.constant 0 : index
      %64 = vector.load %arg7[%c0_35, %c0_36] : memref<8x128xf32, #tpu.memory_space<vmem>>, vector<8x128xf32>
      %65 = vector.shape_cast %64 : vector<8x128xf32> to vector<1x8x128xf32>
      %cst_37 = arith.constant dense<0.000000e+00> : vector<1xf32>
      %66 = vector.multi_reduction <add>, %65, %cst_37 [1, 2] : vector<1x8x128xf32> to vector<1xf32>
      %67 = vector.shape_cast %66 : vector<1xf32> to vector<1x1x1xf32>
      %68 = vector.extract %67[0, 0, 0] : f32 from vector<1x1x1xf32>
      %cst_38 = arith.constant 3.906250e-04 : f32
      %69 = arith.mulf %58, %cst_38 : f32
      %cst_39 = arith.constant 1.000000e+00 : f32
      %70 = arith.mulf %cst_39, %63 : f32
      %cst_40 = arith.constant 1.000000e+00 : f32
      %71 = arith.maximumf %68, %cst_40 : f32
      %72 = arith.divf %70, %71 : f32
      %73 = arith.addf %69, %72 : f32
      %cst_41 = arith.constant 5.000000e-01 : f32
      %74 = arith.mulf %73, %cst_41 : f32
      %cst_42 = arith.constant 0.000000e+00 : f32
      %75 = arith.cmpf oeq, %68, %cst_42 : f32
      %76 = arith.select %75, %69, %74 : f32
      %c0_43 = arith.constant 0 : index
      %c0_44 = arith.constant 0 : index
      %77 = memref.load %arg4[%c0_43, %c0_44] : memref<1x1xf32, #tpu.memory_space<smem>>
      memref.store %76, %arg4[%c0_43, %c0_44] : memref<1x1xf32, #tpu.memory_space<smem>>
    } else {
    }
    return
  }
  func.func @transform_0(%arg0: i32) -> (i32, i32) {
    %c0_i32 = arith.constant 0 : i32
    %c0_i32_0 = arith.constant 0 : i32
    return %arg0, %c0_i32 : i32, i32
  }
  func.func @transform_1(%arg0: i32) -> (i32, i32) {
    %c0_i32 = arith.constant 0 : i32
    %c0_i32_0 = arith.constant 0 : i32
    return %arg0, %c0_i32 : i32, i32
  }
  func.func @transform_2(%arg0: i32) -> (i32, i32) {
    %c0_i32 = arith.constant 0 : i32
    %c0_i32_0 = arith.constant 0 : i32
    return %arg0, %c0_i32 : i32, i32
  }
  func.func @transform_3(%arg0: i32) -> (i32, i32) {
    %c0_i32 = arith.constant 0 : i32
    %c0_i32_0 = arith.constant 0 : i32
    %c0_i32_1 = arith.constant 0 : i32
    return %c0_i32, %c0_i32_0 : i32, i32
  }
}

</mosaic_0001>

<bundles_post_ra>
// kernel: tpu_custom_call.1
= control target key start
LH: loop header
LB: loop body
LE: loop exit
PB: predicated region body
PF: predicated region fallthrough
CT: control target
= control target key end

     0   :  { %8 = vsyncpa [#allocation6], 0  ;;  %s922_s0 = inlined_call_operand.hbm [shape: f32[20,128], index: 0, kind: input, shape index: {}]   ;;  %s923_s1 = inlined_call_operand.hbm [shape: f32[20,128], index: 1, kind: input, shape index: {}]   ;;  %s924_s2 = inlined_call_operand.hbm [shape: f32[20,128], index: 2, kind: input, shape index: {}]   ;;  %s925_s3 = inlined_call_operand.hbm [shape: f32[1,1], index: 3, kind: output, shape index: {}]  }
   0x1   :  { %10 = vsyncpa [#allocation6 + $0x1], 0 }
   0x2   :  { %11 = vsyncpa [#allocation9], 0 }
   0x3   :  { %13 = vsyncpa [#allocation9 + $0x1], 0 }
   0x4   :  { %14 = vsyncpa [#allocation7], 0  ;;  %s705_s12 = smov 0   ;;  %s707_s13 = smov 0  }
   0x5   :  { %s709_s14 = smov 0   ;;  %s711_s15 = smov 0  }
   0x6 LB: > { %s724_s16 = sadd.s32 4294967295, %s676_s15   ;;  %s727_s17 = sadd.s32 1, %s676_s15   ;;  %s676_s15 = sphi %s711_s15, %s942_s15   ;;  %s672_s14 = sphi %s709_s14, %s941_s14   ;;  %s668_s13 = sphi %s707_s13, %s940_s13   ;;  %s664_s12 = sphi %s705_s12, %s939_s12  }
   0x7   : > { %s24_s18 = ssub.s32 %s676_s15, %s727_s17  ;;  %s27_s19 = sadd.s32 1, %s672_s14 }
   0x8   : > { %p25_p0 = scmp.eq.s32.totalorder %s24_s18, 0  ;;  %p34_p1 = scmp.ne.s32.totalorder %s672_s14, %s668_s13 }
   0x9   : > { %p35_p2 = scmp.eq.s32.totalorder %s676_s15, 0  ;;  %p40_p3 = scmp.ne.s32.totalorder %s668_s13, %s664_s12 }
   0xa   : > { %s737_s20 = scalar_select %p25_p0, %s672_s14, %s27_s19  }
   0xb   : > { %p36_p4 = por %p35_p2, %p34_p1  ;;  %p41_p5 = scmp.eq.s32.totalorder %s724_s16, 0 }
   0xc   : > { %p485_p6 = scmp.lt.s32.totalorder %s676_s15, 3  ;;  %s137_s22 = sand.u32 1, %s672_s14  }
   0xd   : > { %p741_p7 = por %p41_p5, %p40_p3  ;;  %s748_s23 = sshll.u32 %s137_s22, 3 }
   0xe   : > { %s751_s24 = sshll.u32 %s676_s15, 7  ;;  %p753_p8 = pnand %p485_p6, %p36_p4 }
   0xf   : > { %s928_s21 = scalar_select %p741_p7, 1, 0 }
  0x10   : > { %s929_s25 = scalar_select %p753_p8, 1, 0 }
  0x11   : > { %s155_s26 = sand.u32 1, %s676_s15   ;;  %s762_s29 = scalar_lea.hbm %s923_s1, %s751_s24 }
  0x12   : > { %s159_s30 = scalar_lea.vmem [#allocation8], %s748_s23  ;;  %s769_s5 = scalar_lea.sflag [#allocation9], %s155_s26 }
  0x13   : > { %s166_s4 = sshll.u32 %s159_s30, 4  ;;  %s532_s6 = scalar_lea.hbm %s762_s29, 128  ;;  %s766_s4 = int_to_ptr.vmem [resolvable:$true] %s166_s4 }
  0x14   : > { %p533_p11 = scmp.ne.s32.totalorder %s762_s29, %s532_s6  ;;  %p775_p12 = pneg %p753_p8 }
  0x15   : > { %s537_s10 = scalar_lea.hbm %s923_s1, 384  ;;  %p538_p1 = scmp.lt.u32.totalorder %s762_s29, %s923_s1 }
  0x16   : > { %p535_p13 = pnand %p775_p12, %p533_p11  ;;  %p539_p2 = scmp.lt.u32.totalorder %s537_s10, %s532_s6 }
  0x17   : > { %p541_p4 = scmp.lt.u32.totalorder %s532_s6, %s762_s29 }
  0x18   : > { %p536_p0 = pneg %p535_p13  ;;  %p540_p3 = por %p539_p2, %p538_p1 }
  0x1a   : > { %p542_p5 = por %p541_p4, %p540_p3 }
  0x1c   : > { %p543_p6 = pnand %p542_p5, %p536_p0 }
  0x1e   : > { %546 = shalt.err (!%p543_p6)
}
  0x1f   : > { %s547_s18 = scalar_lea.vmem %s766_s4, 128  ;;  %s678_s19 = smov [#allocation8]  }
  0x20   : > { %p548_p11 = scmp.ne.s32.totalorder %s766_s4, %s547_s18  ;;  %s552_s26 = sshll.u32 %s678_s19, 4  ;;  %s553_s26 = int_to_ptr.vmem [resolvable:$false] %s552_s26 }
  0x21   : > { %s554_s27 = scalar_lea.vmem %s553_s26, 256  ;;  %p555_p10 = scmp.lt.s32.totalorder %s766_s4, %s553_s26 }
  0x22   : > { %p550_p13 = pnand %p548_p11, %p775_p12  ;;  %p556_p7 = scmp.lt.s32.totalorder %s554_s27, %s547_s18 }
  0x24   : > { %p551_p9 = pneg %p550_p13  ;;  %p557_p1 = por %p556_p7, %p555_p10 }
  0x26   : > { %p558_p2 = pnand %p557_p1, %p551_p9 }
  0x28   : > { %561 = shalt.err (!%p558_p2)
}
  0x29   : > { %481 = dma.hbm_to_vmem [thread:$0]  (!%p753_p8), %s762_s29, 128, %s766_s4, %s769_s5  }
  0x2a   : > { %p931_p0 = scmp.lt.s32.totalorder %s676_s15, 4  ;;  %p932_p3 = scmp.ge.s32.totalorder %s676_s15, 1 }
  0x2b   : > { %s811_s8 = scalar_lea.hbm %s922_s0, %s751_s24  ;;  %s141_s9 = scalar_lea.vmem [#allocation5], %s748_s23 }
  0x2c   : > { %p803_p4 = pnand %p932_p3, %p931_p0  ;;  %s148_s10 = sshll.u32 %s141_s9, 4  ;;  %s814_s10 = int_to_ptr.vmem [resolvable:$true] %s148_s10 }
  0x2d   : > { %s820_s15 = scalar_lea.hbm %s924_s2, %s751_s24  ;;  %s138_s11 = scalar_lea.sflag [#allocation6], %s137_s22 }
  0x2e   : > { %s933_s28 = scalar_select %p803_p4, 1, 0 }
  0x2f   : > { %s562_s12 = scalar_lea.hbm %s811_s8, 128  ;;  %s567_s26 = scalar_lea.hbm %s922_s0, 384 }
  0x30   : > { %p563_p7 = scmp.ne.s32.totalorder %s811_s8, %s562_s12  ;;  %p568_p5 = scmp.lt.u32.totalorder %s811_s8, %s922_s0 }
  0x31   : > { %p569_p6 = scmp.lt.u32.totalorder %s567_s26, %s562_s12  ;;  %p571_p13 = scmp.lt.u32.totalorder %s562_s12, %s811_s8 }
  0x32   : > { %p565_p9 = pnand %p563_p7, %p775_p12 }
  0x33   : > { %p570_p11 = por %p569_p6, %p568_p5 }
  0x34   : > { %p566_p10 = pneg %p565_p9 }
  0x35   : > { %p572_p1 = por %p571_p13, %p570_p11 }
  0x37   : > { %p573_p2 = pnand %p572_p1, %p566_p10 }
  0x39   : > { %576 = shalt.err (!%p573_p2)
}
  0x3a   : > { %s577_s22 = scalar_lea.vmem %s814_s10, 128  ;;  %s679_s24 = smov [#allocation5]  }
  0x3b   : > { %p578_p0 = scmp.ne.s32.totalorder %s814_s10, %s577_s22  ;;  %s582_s6 = sshll.u32 %s679_s24, 4  ;;  %s583_s6 = int_to_ptr.vmem [resolvable:$false] %s582_s6 }
  0x3c   : > { %s584_s9 = scalar_lea.vmem %s583_s6, 256  ;;  %p585_p9 = scmp.lt.s32.totalorder %s814_s10, %s583_s6 }
  0x3d   : > { %p580_p3 = pnand %p578_p0, %p775_p12  ;;  %p586_p4 = scmp.lt.s32.totalorder %s584_s9, %s577_s22 }
  0x3f   : > { %p581_p7 = pneg %p580_p3  ;;  %p587_p5 = por %p586_p4, %p585_p9 }
  0x41   : > { %p588_p6 = pnand %p587_p5, %p581_p7 }
  0x43   : > { %591 = shalt.err (!%p588_p6)
}
  0x44   : > { %478 = dma.hbm_to_vmem [thread:$0]  (!%p753_p8), %s811_s8, 128, %s814_s10, %s138_s11  }
  0x45   : > { %s177_s29 = scalar_lea.vmem [#allocation10], %s748_s23  ;;  %s592_s12 = scalar_lea.hbm %s820_s15, 128 }
  0x46   : > { %s184_s4 = sshll.u32 %s177_s29, 4  ;;  %p593_p10 = scmp.ne.s32.totalorder %s820_s15, %s592_s12  ;;  %s185_s4 = int_to_ptr.vmem [resolvable:$true] %s184_s4 }
  0x47   : > { %s597_s26 = scalar_lea.hbm %s924_s2, 384  ;;  %p598_p13 = scmp.lt.u32.totalorder %s820_s15, %s924_s2 }
  0x48   : > { %p595_p4 = pnand %p593_p10, %p775_p12  ;;  %p599_p1 = scmp.lt.u32.totalorder %s597_s26, %s592_s12 }
  0x49   : > { %p601_p0 = scmp.lt.u32.totalorder %s592_s12, %s820_s15 }
  0x4a   : > { %p596_p11 = pneg %p595_p4  ;;  %p600_p2 = por %p599_p1, %p598_p13 }
  0x4c   : > { %p602_p3 = por %p601_p0, %p600_p2 }
  0x4e   : > { %p603_p7 = pnand %p602_p3, %p596_p11 }
  0x50   : > { %606 = shalt.err (!%p603_p7)
}
  0x51   : > { %s607_s23 = scalar_lea.vmem %s185_s4, 128  ;;  %s680_s8 = smov [#allocation10]  }
  0x52   : > { %p608_p9 = scmp.ne.s32.totalorder %s185_s4, %s607_s23  ;;  %s612_s10 = sshll.u32 %s680_s8, 4  ;;  %s613_s10 = int_to_ptr.vmem [resolvable:$false] %s612_s10 }
  0x53   : > { %s614_s11 = scalar_lea.vmem %s613_s10, 256  ;;  %p615_p10 = scmp.lt.s32.totalorder %s185_s4, %s613_s10 }
  0x54   : > { %p610_p5 = pnand %p608_p9, %p775_p12  ;;  %p616_p4 = scmp.lt.s32.totalorder %s614_s11, %s607_s23 }
  0x56   : > { %p611_p6 = pneg %p610_p5  ;;  %p617_p8 = por %p616_p4, %p615_p10 }
  0x58   : > { %p618_p1 = pnand %p617_p8, %p611_p6 }
  0x5a   : > { %621 = shalt.err (!%p618_p1)
}
  0x5b   : > { %p934_p13 = scmp.ne.s32.totalorder %s929_s25, 0  ;;  %p935_p11 = scmp.ne.s32.totalorder %s933_s28, 0 }
  0x5c   : > { %s195_s7 = sand.u32 (!%p935_p11), 1, %s668_s13   ;;  %p936_p12 = scmp.ne.s32.totalorder (!%p935_p11), %s928_s21, 0 }
  0x5d   : > { %484 = dma.hbm_to_vmem [thread:$0]  (!%p934_p13), %s820_s15, 128, %s185_s4, %s769_s5  }
  0x5e   : > { %193 = sbr.rel (%p935_p11) target bundleno = 444 (0x1bc), region = 32  ;;  %s867_s22 = sshll.u32 (!%p935_p11), %s195_s7, 3 }
  0x5f   : > { %s196_s24 = scalar_lea.sflag (!%p935_p11), [#allocation6], %s195_s7  ;;  %s199_s6 = scalar_lea.vmem (!%p935_p11), [#allocation5], %s867_s22 }
  0x65   : > { %651 = dma.done.wait (%p936_p12), %s196_s24, 128  }
  0x66   : > { %653 = vsyncadd (%p936_p12), %s196_s24, 4294967168  ;;  %s204_s25 = sand.u32 1, %s724_s16   ;;  %s208_s28 = scalar_lea.vmem [#allocation8], %s867_s22 }
  0x67   : > { %s205_s5 = scalar_lea.sflag [#allocation9], %s204_s25 }
  0x68   : > { %655 = dma.done.wait (%p936_p12), %s205_s5, 256  }
  0x69   : > { %657 = vsyncadd (%p936_p12), %s205_s5, 4294967040  ;;  %s217_s15 = scalar_lea.vmem [#allocation10], %s867_s22  ;;  %p450_p8 = scmp.ne.s32.totalorder %s724_s16, 0 }
  0x6a   : > { %v681_v0 = vmov (!%p450_p8), 0.0  }
  0x6b   : > { %248 = sbr.rel (%p450_p8) target bundleno = 114 (0x72), region = 48  ;;  %249 = vst [vmem:[#allocation2] sm:$0xff] (!%p450_p8), %v681_v0  ;;  %250 = vst [vmem:[#allocation3] sm:$0xff] (!%p450_p8), %v681_v0 }
  0x6c   : > { %251 = vst [vmem:[#allocation4] sm:$0xff] (!%p450_p8), %v681_v0 }
  0x72 PF: > { %v252_v1 = vld [vmem:[%s199_s6] sm:$0xff]  ;;  %v273_v2 = vlaneseq  ;;  %s451_s9 = sshll.u32 %s724_s16, 3  ;;  %v682_v12 = vmov 0.0   ;;  %v253_v16 = vld [vmem:[%s208_s28] sm:$0xff]  ;;  %p452_p2 = scmp.ne.s32.totalorder %s724_s16, 2 }
  0x73   : > { %524 = vlog2.f32 %v252_v1  ;;  %v258_v3 = vsub.f32 1.0, %v252_v1  ;;  %v276_v4 = vstv %s451_s9  ;;  %v254_v5 = vld [vmem:[%s217_s15] sm:$0xff]  ;;  %v288_v10 = vld [vmem:[#allocation4] sm:$0xff]  ;;  %v263_v21 = vsub.f32 1.0, %v253_v16  ;;  %v284_v28 = vld [vmem:[#allocation3] sm:$0xff]  ;;  %s683_s12 = smov (!%p452_p2), 1.0  }
  0x74   : > { %v274_v6 = vshrl.u32 %v273_v2, 7  ;;  %v267_v7 = vsub.f32 1.0, %v254_v5  ;;  %v281_v32 = vld [vmem:[#allocation2] sm:$0xff] }
  0x75   : > { %526 = vlog2.f32 %v258_v3 }
  0x76   : > { %v277_v8 = vadd.s32 %v276_v4, %v274_v6  ;;  %v268_v9 = vmax.f32 %v254_v5, %v267_v7 }
  0x78   : > { %vm278_vm0 = vcmp.lt.s32.totalorder %v277_v8, 20  ;;  %vm269_vm1 = vcmp.gt.f32.partialorder %v268_v9, 0.5  ;;  %528 = vlog2.f32 %v268_v9 }
  0x79   : > { %vm884_vm2 = vmand %vm269_vm1, %vm278_vm0 }
  0x7a   : > { %v289_v13 = vsel %vm884_vm2, 1.0, %v682_v12 }
  0x7b   : > { %v290_v14 = vadd.f32 %v289_v13, %v288_v10 }
  0x7d   : > { %v525_v15 = vpop.eup %524  ;;  %291 = vst [vmem:[#allocation4] sm:$0xff] %v290_v14 }
  0x7e   : > { %v256_v17 = vmul.f32 0.6931472, %v525_v15 }
  0x7f   : > { %v527_v18 = vpop.eup %526 }
  0x80   : > { %v257_v19 = vmax.f32 %v256_v17, -100.0  ;;  %v260_v20 = vmul.f32 0.6931472, %v527_v18 }
  0x82   : > { %v529_v22 = vpop.eup %528  ;;  %v261_v23 = vmax.f32 %v260_v20, -100.0  ;;  %v262_v24 = vmul.f32 %v257_v19, %v253_v16 }
  0x83   : > { %v271_v25 = vmul.f32 0.6931472, %v529_v22 }
  0x84   : > { %v264_v26 = vmul.f32 %v263_v21, %v261_v23  ;;  %v316_v36 = vld [vmem:[#allocation4] sm:$0xff] (!%p452_p2) }
  0x85   : > { %v272_v27 = vsub.f32 0.0, %v271_v25  ;;  %317 = vadd.xlane.f32.xlu1 (!%p452_p2), %v316_v36 }
  0x86   : > { %v265_v29 = vadd.f32 %v264_v26, %v262_v24 }
  0x87   : > { %v285_v30 = vsel %vm884_vm2, %v272_v27, 0.0  ;;  %295 = sbr.rel (%p452_p2) target bundleno = 429 (0x1ad), region = 52 }
  0x88   : > { %v266_v31 = vsub.f32 0.0, %v265_v29  ;;  %v286_v33 = vadd.f32 %v285_v30, %v284_v28 }
  0x8a   : > { %v279_v34 = vsel %vm278_vm0, %v266_v31, 0.0  ;;  %287 = vst [vmem:[#allocation3] sm:$0xff] %v286_v33 }
  0x8b   : > { %v282_v35 = vadd.f32 %v281_v32, %v279_v34 }
  0x8d   : > { %283 = vst [vmem:[#allocation2] sm:$0xff] %v282_v35 }
  0x91   : > { %v306_v38 = vld [vmem:[#allocation3] sm:$0xff] }
  0x94   : > { %v296_v37 = vld [vmem:[#allocation2] sm:$0xff] }
  0x95   : > { %297 = vadd.xlane.f32.xlu0 %v296_v37 }
  0x99   : > { %307 = vadd.xlane.f32.xlu0 %v306_v38 }
 0x112   : > { %v318_v39 = vpop.xlane.xlu1 %317 }
 0x113   : > { %v319_v41 = vrot.slane %v318_v39, 4 }
 0x115   : > { %v320_v43 = vadd.f32 %v319_v41, %v318_v39 }
 0x117   : > { %v321_v46 = vrot.slane %v320_v43, 2 }
 0x119   : > { %v322_v51 = vadd.f32 %v321_v46, %v320_v43 }
 0x11b   : > { %v323_v56 = vrot.slane %v322_v51, 1 }
 0x11d   : > { %v324_v59 = vadd.f32 %v323_v56, %v322_v51 }
 0x122   : > { %v298_v40 = vpop.xlane.xlu0 %297 }
 0x123   : > { %v299_v42 = vrot.slane %v298_v40, 4 }
 0x125   : > { %v300_v44 = vadd.f32 %v299_v42, %v298_v40 }
 0x126   : > { %v308_v45 = vpop.xlane.xlu0 %307 }
 0x127   : > { %v301_v47 = vrot.slane %v300_v44, 2  ;;  %v309_v48 = vrot.slane %v308_v45, 4 }
 0x129   : > { %v310_v49 = vadd.f32 %v309_v48, %v308_v45  ;;  %v302_v50 = vadd.f32 %v301_v47, %v300_v44 }
 0x12b   : > { %v311_v52 = vrot.slane %v310_v49, 2  ;;  %v303_v53 = vrot.slane %v302_v50, 1 }
 0x12d   : > { %v312_v54 = vadd.f32 %v311_v52, %v310_v49  ;;  %v304_v55 = vadd.f32 %v303_v53, %v302_v50 }
 0x12f   : > { %457 = vpush %v304_v55  ;;  %v313_v57 = vrot.slane %v312_v54, 1 }
 0x131   : > { %v314_v58 = vadd.f32 %v313_v57, %v312_v54 }
 0x133   : > { %459 = vpush %v314_v58 }
 0x134   : > { %461 = vpush %v324_v59 }
 0x160   : > { %s458_s21 = spop %457 }
 0x161   : > { %s326_s19 = smul.f32 0.000390625, %s458_s21 }
 0x164   : > { %s460_s29 = spop %459 }
 0x165   : > { %s462_s4 = spop %461 }
 0x166   : > { %s327_s18 = smax.f32 %s683_s12, %s462_s4  ;;  %p334_p0 = scmp.eq.f32.partialorder %s462_s4, 0.0 }
 0x167   : > { %v328_v60 = vstv %s327_s18 }
 0x168   : > { %530 = vrcp.f32 %v328_v60 }
 0x172   : > { %v531_v61 = vpop.eup %530 }
 0x173   : > { %463 = vpush %v531_v61 }
 0x1a4   : > { %s464_s26 = spop %463 }
 0x1a5   : > { %s331_s27 = smul.f32 %s464_s26, %s460_s29 }
 0x1a7   : > { %s332_s30 = sadd.f32 %s331_s27, %s326_s19 }
 0x1a9   : > { %s333_s23 = smul.f32 0.5, %s332_s30 }
 0x1ab   : > { %s944_s19 = smov (!%p334_p0, %s326_s19), %s333_s23 }
 0x1ac   : > { %337 = sst [smem:[#allocation11]] %s944_s19 }
 0x1ad PF: > { %p486_p3 = scmp.eq.s32.totalorder %s724_s16, 2  ;;  %s622_s11 = scalar_lea.hbm %s925_s3, 16 }
 0x1ae   : > { %p623_p7 = scmp.ne.s32.totalorder %s925_s3, %s622_s11  ;;  %p628_p6 = scmp.lt.u32.totalorder %s622_s11, %s925_s3 }
 0x1b0   : > { %p624_p9 = pnand %p623_p7, %p486_p3 }
 0x1b2   : > { %p625_p5 = pneg %p624_p9 }
 0x1b4   : > { %p630_p10 = pnand %p628_p6, %p625_p5 }
 0x1b6   : > { %633 = shalt.err (!%p630_p10)
}
 0x1b7   : > { %s684_s25 = smov [#allocation11]  }
 0x1b8   : > { %472 = dma.smem_to_hbm (%p486_p3), %s684_s25, 16, %s925_s3, [#allocation7]  }
 0x1b9   : > { %659 = dma.done.wait (%p486_p3), [#allocation7], 16  }
 0x1ba   : > { %661 = vsyncadd (%p486_p3), [#allocation7], 4294967280 }
 0x1bb   : > { %351 = sfence }
 0x1bc PF: > { %p17_p4 = scmp.ge.s32.totalorder %s727_s17, 5   ;;  %s939_s12 = smov %s668_s13 }
 0x1bd   : > { %s940_s13 = smov %s672_s14  ;;  %s941_s14 = smov %s737_s20 }
 0x1be   : > { %s942_s15 = smov %s727_s17  ;;  %19 = sbr.rel (!%p17_p4) target bundleno = 6 (0x6), region = 102 }
 0x1c5   :  { %357 = vsyncpa [#allocation6], 1 }
 0x1c6   :  { %359 = vsyncpa [#allocation6 + $0x1], 1 }
 0x1c7   :  { %360 = vsyncpa [#allocation9], 1 }
 0x1c8   :  { %362 = vsyncpa [#allocation9 + $0x1], 1 }
 0x1c9   :  { %363 = vsyncpa [#allocation7], 1 }
 0x1ca   :  { %365 = vsyncpa [#allocation7 + $0x1], 1 }

</bundles_post_ra>
